<compile_context>
chip_gen: v5e
topology: v5e:2x2
jax: 0.10.0
libtpu: 0.0.40
codegen_flags: <defaults>
</compile_context>

<pallas_src>
import jax
import jax.numpy as jnp
from jax.experimental import pallas as pl
from jax.experimental.pallas import tpu as pltpu

LANE = 128
SLAB_COLS = 4 * LANE           # 512-wide lane-dense slab -> unmasked vst
BLOCK_ROWS = 512               # 512 x 512 f32 = 1 MiB tile for the streaming path
FUSE_MAX_ELEMS = 256 * 1024    # <= 1 MiB f32-equivalent -> fused single-pass kernel
VMEM_LIMIT = 32 * 1024 * 1024  # explicit scoped-VMEM budget (safe on v5e/v6e/v7x)


# ---------------------------------------------------------------------------
# Fused single-pass kernel: whole (padded) slab resident in VMEM.
#   - reduce mean / unbiased std / min
#   - binarize with threshold act_std * std
# ---------------------------------------------------------------------------
def _make_fused_kernel(n_valid, pad, act_std):
    inv_n = 1.0 / float(n_valid)
    inv_nm1 = (1.0 / float(n_valid - 1)) if n_valid > 1 else float('nan')

    def kernel(x_ref, o_ref, min_ref):
        x = x_ref[...].astype(jnp.float32)

        if pad:  # zero padding lives at the tail of the flat slab
            rows, cols = x.shape
            flat = (jax.lax.broadcasted_iota(jnp.int32, (rows, cols), 0) * cols
                    + jax.lax.broadcasted_iota(jnp.int32, (rows, cols), 1))
            valid = flat < n_valid
            x_sum = jnp.where(valid, x, 0.0)
            x_min = jnp.where(valid, x, jnp.inf)
        else:
            valid = None
            x_sum = x
            x_min = x

        mean = jnp.sum(x_sum) * inv_n
        d = x_sum - mean
        if pad:
            d = jnp.where(valid, d, 0.0)
        var = jnp.sum(d * d) * inv_nm1                 # torch.std: unbiased
        th = jnp.float32(act_std) * jnp.sqrt(var)

        min_ref[0, 0] = jnp.min(x_min)

        sgn = jnp.where(x > 0.0, 1.0, jnp.where(x < 0.0, -1.0, 0.0))
        o_ref[...] = jnp.where(x < th, 0.0, sgn).astype(o_ref.dtype)

    return kernel


# ---------------------------------------------------------------------------
# Two-pass streaming path, pass 1: sum / sum^2 / min reduction.
# Block-shaped VMEM accumulators updated elementwise (VPU only) each step;
# the single cross-lane reduce + SMEM scalar store happens on the last step.
# ---------------------------------------------------------------------------
def _make_reduce_kernel(total_rows, block_rows):
    needs_mask = (total_rows % block_rows) != 0

    def kernel(x_ref, sum_ref, sq_ref, min_ref, acc_sum, acc_sq, acc_min):
        i = pl.program_id(0)

        @pl.when(i == 0)
        def _():
            acc_sum[...] = jnp.zeros_like(acc_sum)
            acc_sq[...] = jnp.zeros_like(acc_sq)
            acc_min[...] = jnp.full_like(acc_min, jnp.inf)

        x = x_ref[...].astype(jnp.float32)
        if needs_mask:  # tail grid block: rows beyond the array are garbage
            row = i * block_rows + jax.lax.broadcasted_iota(jnp.int32, x.shape, 0)
            valid = row < total_rows
            xs = jnp.where(valid, x, 0.0)
            xm = jnp.where(valid, x, jnp.inf)
        else:
            xs = x
            xm = x

        acc_sum[...] = acc_sum[...] + xs
        acc_sq[...] = acc_sq[...] + xs * xs
        acc_min[...] = jnp.minimum(acc_min[...], xm)

        @pl.when(i == pl.num_programs(0) - 1)
        def _():
            sum_ref[0, 0] = jnp.sum(acc_sum[...])
            sq_ref[0, 0] = jnp.sum(acc_sq[...])
            min_ref[0, 0] = jnp.min(acc_min[...])

    return kernel


# ---------------------------------------------------------------------------
# Two-pass streaming path, pass 2: elementwise binarize.
#   th_ref (SMEM, scalar prefetch) = [act_std * std]
# ---------------------------------------------------------------------------
def _binarize_kernel(th_ref, x_ref, o_ref):
    th = th_ref[0]
    x = x_ref[...].astype(jnp.float32)
    sgn = jnp.where(x > 0.0, 1.0, jnp.where(x < 0.0, -1.0, 0.0))
    o_ref[...] = jnp.where(x < th, 0.0, sgn).astype(o_ref.dtype)


# ---------------------------------------------------------------------------
# Wrapper reproducing Binary_act_quantizer_std.forward semantics
# ---------------------------------------------------------------------------
def binary_act_quantizer_std_forward(x, W=2, act_std=None, noise_scale=0,
                                     noise_method='add', noise_range='max',
                                     _force_two_pass=False):
    if W != 2:
        raise ValueError("binary activation quantizer's W must set 2. ")
    if act_std is None:
        raise ValueError("act_std must be provided for Binary_act_STE_std")
    if noise_scale != 0:
        # TODO(synk): add_noise uses torch.randn_like; noise injection not implemented.
        raise NotImplementedError("noise_scale != 0 not supported in this Pallas kernel")

    orig_shape = x.shape
    dtype = x.dtype
    flat = x.reshape(-1)
    n = flat.size
    if n == 0:
        return jnp.zeros(orig_shape, dtype)

    # lane-dense 2-D slab in the NATIVE dtype (no f32 upcast in HBM)
    C = SLAB_COLS
    pad = (-n) % C
    if pad:
        # zero pad only up to a lane multiple (neutral for sum/sum^2; min masked in-kernel)
        flat = jnp.pad(flat, (0, pad))
    x2 = flat.reshape(-1, C)
    R = x2.shape[0]

    if (n <= FUSE_MAX_ELEMS) and not _force_two_pass:
        # ---- fused single-pass, VMEM-resident: 1 HBM read + 1 HBM write ----
        out2, mn = pl.pallas_call(
            _make_fused_kernel(n, pad, float(act_std)),
            out_shape=(jax.ShapeDtypeStruct((R, C), dtype),
                       jax.ShapeDtypeStruct((1, 1), jnp.float32)),
            grid_spec=pltpu.PrefetchScalarGridSpec(
                num_scalar_prefetch=0,
                grid=(1,),
                in_specs=[pl.BlockSpec((R, C), lambda i: (0, 0))],
                out_specs=(pl.BlockSpec((R, C), lambda i: (0, 0)),
                           pl.BlockSpec((1, 1), lambda i: (0, 0),
                                        memory_space=pltpu.MemorySpace.SMEM))),
            compiler_params=pltpu.CompilerParams(
                dimension_semantics=("arbitrary",),
                vmem_limit_bytes=VMEM_LIMIT),
        )(x2)
    else:
        # ---- two-pass streaming path with large tiles ----
        BR = R if R <= BLOCK_ROWS else BLOCK_ROWS
        grid = (pl.cdiv(R, BR),)

        s, sq, mn = pl.pallas_call(
            _make_reduce_kernel(R, BR),
            out_shape=(jax.ShapeDtypeStruct((1, 1), jnp.float32),) * 3,
            grid_spec=pltpu.PrefetchScalarGridSpec(
                num_scalar_prefetch=0,
                grid=grid,
                in_specs=[pl.BlockSpec((BR, C), lambda i: (i, 0))],
                out_specs=tuple(
                    pl.BlockSpec((1, 1), lambda i: (0, 0),
                                 memory_space=pltpu.MemorySpace.SMEM)
                    for _ in range(3)),
                scratch_shapes=[pltpu.VMEM((BR, C), jnp.float32)] * 3),
            compiler_params=pltpu.CompilerParams(
                dimension_semantics=("arbitrary",),
                vmem_limit_bytes=VMEM_LIMIT),
        )(x2)

        # scalar glue: unbiased std via E[x^2] - E[x]^2 (zero pad is neutral)
        s_val = s[0, 0]
        sq_val = sq[0, 0]
        mean = s_val * (1.0 / float(n))
        inv_nm1 = (1.0 / float(n - 1)) if n > 1 else float('nan')
        var = jnp.maximum(sq_val - float(n) * mean * mean, 0.0) * inv_nm1
        th = jnp.float32(act_std) * jnp.sqrt(var)
        th_arr = jnp.reshape(th, (1,)).astype(jnp.float32)

        out2 = pl.pallas_call(
            _binarize_kernel,
            out_shape=jax.ShapeDtypeStruct((R, C), dtype),
            grid_spec=pltpu.PrefetchScalarGridSpec(
                num_scalar_prefetch=1,
                grid=grid,
                in_specs=[pl.BlockSpec((BR, C), lambda i, p: (i, 0))],
                out_specs=pl.BlockSpec((BR, C), lambda i, p: (i, 0))),
            compiler_params=pltpu.CompilerParams(
                dimension_semantics=("parallel",),
                vmem_limit_bytes=VMEM_LIMIT),
        )(th_arr, x2)

    # Binary_act_STE_std raises if the input has any value below 0 (mirrors .item() sync)
    if float(mn[0, 0]) < 0:
        raise ValueError("Binary_act_STE_std's input has data below 0! ")

    out_flat = out2.reshape(-1)
    if pad:
        out_flat = out_flat[:n]
    return out_flat.reshape(orig_shape)


# ---------------------------------------------------------------------------
# Pure-JAX reference (forward of Binary_act_STE_std, noise_scale=0)
# ---------------------------------------------------------------------------
def _reference(x, act_std):
    xf = x.astype(jnp.float32)
    std = jnp.std(xf, ddof=1)
    th = jnp.float32(act_std) * std
    out = jnp.where(xf < th, 0.0, jnp.sign(xf))
    return out.astype(x.dtype), th


def _assert_matches(y, y_ref, x, th):
    diff = y.astype(jnp.float32) != y_ref.astype(jnp.float32)
    # tolerate flips only for elements sitting numerically on the threshold
    near = jnp.abs(x.astype(jnp.float32) - th) <= 1e-4 * jnp.maximum(th, jnp.float32(1e-6))
    assert bool(jnp.all(jnp.logical_or(~diff, near))), "mismatch vs reference"


if __name__ == "__main__":
    key = jax.random.PRNGKey(0)
    # non-negative activations (module requires input.min() >= 0)
    x = jax.random.uniform(key, (2, 4, 16, 16), dtype=jnp.float32)
    act_std = 0.5

    # fused single-pass path
    y = jax.block_until_ready(binary_act_quantizer_std_forward(x, W=2, act_std=act_std))
    y_ref, th_ref = _reference(x, act_std)
    assert y.shape == x.shape and y.dtype == x.dtype
    _assert_matches(y, y_ref, x, th_ref)

    # tiled two-pass streaming path (forced, to exercise it at small size)
    y2 = jax.block_until_ready(
        binary_act_quantizer_std_forward(x, W=2, act_std=act_std, _force_two_pass=True))
    _assert_matches(y2, y_ref, x, th_ref)

    # native bf16 path (no f32 upcast in HBM)
    xb = x.astype(jnp.bfloat16)
    yb = jax.block_until_ready(binary_act_quantizer_std_forward(xb, W=2, act_std=act_std))
    yb_ref, thb_ref = _reference(xb, act_std)
    assert yb.dtype == jnp.bfloat16
    _assert_matches(yb, yb_ref, xb, thb_ref)

    # negative input must raise, like the PyTorch module
    neg = x.at[0, 0, 0, 0].set(-1.0)
    raised = False
    try:
        jax.block_until_ready(binary_act_quantizer_std_forward(neg, W=2, act_std=act_std))
    except ValueError:
        raised = True
    assert raised, "negative input must raise ValueError"

    print("KERNEL_OK")
</pallas_src>

<mosaic_0001>
module attributes {stable_mosaic.version = 11 : i64} {
  func.func @kernel(%arg0: i32, %arg1: memref<4x512xf32, #tpu.memory_space<vmem>>, %arg2: memref<4x512xf32, #tpu.memory_space<vmem>>, %arg3: memref<1x1xf32, #tpu.memory_space<smem>>) attributes {dimension_semantics = [#tpu.dimension_semantics<arbitrary>], iteration_bounds = array<i64: 1>, scalar_prefetch = 0 : i64, scratch_operands = 0 : i64, tpu.core_type = #tpu.core_type<tc>, window_params = [{pipeline_mode = #tpu.pipeline_mode<synchronous>, transform_indices = @transform_0, window_bounds = array<i64: 4, 512>}, {pipeline_mode = #tpu.pipeline_mode<synchronous>, transform_indices = @transform_1, window_bounds = array<i64: 4, 512>}, {transform_indices = @transform_2, window_bounds = array<i64: 1, 1>}]} {
    %c0 = arith.constant 0 : index
    %c0_0 = arith.constant 0 : index
    %0 = vector.load %arg1[%c0, %c0_0] : memref<4x512xf32, #tpu.memory_space<vmem>>, vector<4x512xf32>
    %1 = vector.shape_cast %0 : vector<4x512xf32> to vector<1x4x512xf32>
    %cst = arith.constant dense<0.000000e+00> : vector<1xf32>
    %2 = vector.multi_reduction <add>, %1, %cst [1, 2] : vector<1x4x512xf32> to vector<1xf32>
    %3 = vector.shape_cast %2 : vector<1xf32> to vector<1x1x1xf32>
    %4 = vector.extract %3[0, 0, 0] : f32 from vector<1x1x1xf32>
    %cst_1 = arith.constant 4.8828125E-4 : f32
    %5 = arith.mulf %4, %cst_1 : f32
    %6 = vector.broadcast %5 : f32 to vector<4x512xf32>
    %7 = arith.subf %0, %6 : vector<4x512xf32>
    %8 = arith.mulf %7, %7 : vector<4x512xf32>
    %9 = vector.shape_cast %8 : vector<4x512xf32> to vector<1x4x512xf32>
    %cst_2 = arith.constant dense<0.000000e+00> : vector<1xf32>
    %10 = vector.multi_reduction <add>, %9, %cst_2 [1, 2] : vector<1x4x512xf32> to vector<1xf32>
    %11 = vector.shape_cast %10 : vector<1xf32> to vector<1x1x1xf32>
    %12 = vector.extract %11[0, 0, 0] : f32 from vector<1x1x1xf32>
    %cst_3 = arith.constant 4.88519785E-4 : f32
    %13 = arith.mulf %12, %cst_3 : f32
    %14 = math.sqrt %13 : f32
    %cst_4 = arith.constant 5.000000e-01 : f32
    %15 = arith.mulf %cst_4, %14 : f32
    %16 = vector.shape_cast %0 : vector<4x512xf32> to vector<1x4x512xf32>
    %cst_5 = arith.constant dense<0x7F800000> : vector<1xf32>
    %17 = vector.multi_reduction <minimumf>, %16, %cst_5 [1, 2] : vector<1x4x512xf32> to vector<1xf32>
    %18 = vector.shape_cast %17 : vector<1xf32> to vector<1x1x1xf32>
    %19 = vector.extract %18[0, 0, 0] : f32 from vector<1x1x1xf32>
    %c0_6 = arith.constant 0 : index
    %c0_7 = arith.constant 0 : index
    %20 = memref.load %arg3[%c0_6, %c0_7] : memref<1x1xf32, #tpu.memory_space<smem>>
    memref.store %19, %arg3[%c0_6, %c0_7] : memref<1x1xf32, #tpu.memory_space<smem>>
    %cst_8 = arith.constant 0.000000e+00 : f32
    %21 = vector.broadcast %cst_8 : f32 to vector<4x512xf32>
    %22 = arith.cmpf ogt, %0, %21 : vector<4x512xf32>
    %cst_9 = arith.constant 0.000000e+00 : f32
    %23 = vector.broadcast %cst_9 : f32 to vector<4x512xf32>
    %24 = arith.cmpf olt, %0, %23 : vector<4x512xf32>
    %cst_10 = arith.constant -1.000000e+00 : f32
    %cst_11 = arith.constant 0.000000e+00 : f32
    %25 = vector.broadcast %cst_10 : f32 to vector<4x512xf32>
    %26 = vector.broadcast %cst_11 : f32 to vector<4x512xf32>
    %27 = arith.select %24, %25, %26 : vector<4x512xi1>, vector<4x512xf32>
    %cst_12 = arith.constant 1.000000e+00 : f32
    %28 = vector.broadcast %cst_12 : f32 to vector<4x512xf32>
    %29 = arith.select %22, %28, %27 : vector<4x512xi1>, vector<4x512xf32>
    %30 = vector.broadcast %15 : f32 to vector<4x512xf32>
    %31 = arith.cmpf olt, %0, %30 : vector<4x512xf32>
    %cst_13 = arith.constant 0.000000e+00 : f32
    %32 = vector.broadcast %cst_13 : f32 to vector<4x512xf32>
    %33 = arith.select %31, %32, %29 : vector<4x512xi1>, vector<4x512xf32>
    %c0_14 = arith.constant 0 : index
    %c0_15 = arith.constant 0 : index
    %34 = vector.load %arg2[%c0_14, %c0_15] : memref<4x512xf32, #tpu.memory_space<vmem>>, vector<4x512xf32>
    tpu.vector_store %arg2[%c0_14, %c0_15], %33 {strides = array<i32>} : memref<4x512xf32, #tpu.memory_space<vmem>>, vector<4x512xf32>,
    return
  }
  func.func @transform_0(%arg0: i32) -> (i32, i32) {
    %c0_i32 = arith.constant 0 : i32
    %c0_i32_0 = arith.constant 0 : i32
    %c0_i32_1 = arith.constant 0 : i32
    return %c0_i32, %c0_i32_0 : i32, i32
  }
  func.func @transform_1(%arg0: i32) -> (i32, i32) {
    %c0_i32 = arith.constant 0 : i32
    %c0_i32_0 = arith.constant 0 : i32
    %c0_i32_1 = arith.constant 0 : i32
    return %c0_i32, %c0_i32_0 : i32, i32
  }
  func.func @transform_2(%arg0: i32) -> (i32, i32) {
    %c0_i32 = arith.constant 0 : i32
    %c0_i32_0 = arith.constant 0 : i32
    %c0_i32_1 = arith.constant 0 : i32
    return %c0_i32, %c0_i32_0 : i32, i32
  }
}

</mosaic_0001>

<bundles_post_ra>
// kernel: tpu_custom_call.1
= control target key start
LH: loop header
LB: loop body
LE: loop exit
PB: predicated region body
PF: predicated region fallthrough
CT: control target
= control target key end

     0   :  { %8 = vsyncpa [#allocation3], 0  ;;  %s321_s0 = inlined_call_operand.hbm [shape: f32[4,512], index: 0, kind: input, shape index: {}]   ;;  %s322_s1 = inlined_call_operand.hbm [shape: f32[4,512], index: 1, kind: output, shape index: {0}]   ;;  %s323_s2 = inlined_call_operand.hbm [shape: f32[1,1], index: 2, kind: output, shape index: {1}]  }
   0x1   :  { %9 = vsyncpa [#allocation4], 0 }
   0x2   :  { %10 = vsyncpa [#allocation5], 0  ;;  %s16_s11 = sshll.u32 %s321_s0, 4  ;;  %s265_s12 = smov [#allocation2]   ;;  %s17_s11 = int_to_ptr.hbm [resolvable:$true] %s16_s11 }
   0x3   :  { %s18_s13 = sshll.u32 %s265_s12, 4  ;;  %s19_s13 = int_to_ptr.vmem [resolvable:$true] %s18_s13 }
   0x4   :  { %21 = dma.hbm_to_vmem [thread:$0]  %s17_s11, 256, %s19_s13, [#allocation3]  }
   0x5   :  { %259 = dma.done.wait [#allocation3], 256  }
   0x6   :  { %260 = vsyncadd [#allocation3], 4294967040  ;;  %v287_v0 = vld [vmem:[#allocation2] sm:$0xff]  ;;  %v289_v1 = vld [vmem:[#allocation2 + $0x8] sm:$0xff]  ;;  %vm41_vm0 = vcmask 1043456   ;;  %s169_s19 = sshll.u32 %s323_s2, 4  ;;  %s170_s19 = int_to_ptr.hbm [resolvable:$true] %s169_s19 }
   0x7   :  { %30 = vst [vmem:[#allocation1] ss:$2 sm:$0xff] %v287_v0  ;;  %vm140_vm3 = vcmp.lt.f32.partialorder %v287_v0, 0.0  ;;  %vm141_vm4 = vcmp.lt.f32.partialorder %v289_v1, 0.0  ;;  %vm138_vm5 = vcmp.gt.f32.partialorder %v287_v0, 0.0  ;;  %vm139_vm6 = vcmp.gt.f32.partialorder %v289_v1, 0.0 }
   0x8   :  { %32 = vst [vmem:[#allocation1 + $0x10] ss:$2 sm:$0xff] %v289_v1  ;;  %s267_s20 = smov [#allocation6]   ;;  %s160_s2 = sshll.u32 %s322_s1, 4  ;;  %s161_s2 = int_to_ptr.hbm [resolvable:$true] %s160_s2 }
   0x9   :  { %s158_s21 = sshll.u32 %s267_s20, 4  ;;  %s268_s27 = smov [#allocation7]   ;;  %s159_s21 = int_to_ptr.vmem [resolvable:$true] %s158_s21 }
   0xe   :  { %v33_v2 = vld.sshfl [vmem:[#allocation1] sm:$0xff pattern:$0x75316420]  ;;  %v34_v3 = vld.sshfl [vmem:[#allocation1 + $0x8] sm:$0xff pattern:$0x75316420] }
   0xf   :  { %v35_v4 = vld.sshfl [vmem:[#allocation1 + $0x10] sm:$0xff pattern:$0x75316420]  ;;  %v36_v5 = vld.sshfl [vmem:[#allocation1 + $0x18] sm:$0xff pattern:$0x75316420] }
  0x10   :  { %v42_v6 = vsel %vm41_vm0, %v33_v2, 0.0  ;;  %v43_v7 = vsel %vm41_vm0, %v34_v3, 0.0  ;;  %v45_v8 = vsel %vm41_vm0, %v35_v4, 0.0  ;;  %v47_v10 = vsel %vm41_vm0, %v36_v5, 0.0 }
  0x11   :  { %v44_v9 = vadd.f32 %v43_v7, %v42_v6 }
  0x13   :  { %v46_v11 = vadd.f32 %v45_v8, %v44_v9 }
  0x15   :  { %v48_v12 = vadd.f32 %v47_v10, %v46_v11  ;;  %v266_v10 = vmov 0.0  }
  0x16   :  { %v142_v11 = vsel %vm140_vm3, -1.0, %v266_v10 }
  0x17   :  { %49 = vadd.xlane.f32.xlu0 %v48_v12  ;;  %v143_v12 = vsel %vm141_vm4, -1.0, %v266_v10 }
  0x8a   :  { %v50_v13 = vpop.xlane.xlu0 %49 }
  0x8b   :  { %v51_v14 = vrot.slane %v50_v13, 4 }
  0x8d   :  { %v52_v15 = vadd.f32 %v51_v14, %v50_v13  ;;  %v144_v13 = vsel %vm138_vm5, 1.0, %v142_v11  ;;  %v145_v14 = vsel %vm139_vm6, 1.0, %v143_v12 }
  0x8f   :  { %v53_v16 = vrot.slane %v52_v15, 2 }
  0x91   :  { %v54_v17 = vadd.f32 %v53_v16, %v52_v15 }
  0x93   :  { %v55_v18 = vrot.slane %v54_v17, 1 }
  0x95   :  { %v56_v19 = vadd.f32 %v55_v18, %v54_v17 }
  0x97   :  { %185 = vpush %v56_v19 }
  0xc8   :  { %s186_s0 = spop %185 }
  0xc9   :  { %s58_s14 = smul.f32 0.00048828125, %s186_s0 }
  0xcb   :  { %v59_v20 = vstv %s58_s14 }
  0xcc   :  { %v60_v21 = vsub.f32 %v287_v0, %v59_v20  ;;  %v61_v22 = vsub.f32 %v289_v1, %v59_v20 }
  0xce   :  { %v62_v23 = vmul.f32 %v60_v21, %v60_v21  ;;  %v63_v24 = vmul.f32 %v61_v22, %v61_v22 }
  0xd0   :  { %66 = vst [vmem:[#allocation1] ss:$2 sm:$0xff] %v62_v23 }
  0xd1   :  { %68 = vst [vmem:[#allocation1 + $0x10] ss:$2 sm:$0xff] %v63_v24 }
  0xd7   :  { %v69_v25 = vld.sshfl [vmem:[#allocation1] sm:$0xff pattern:$0x75316420]  ;;  %v70_v26 = vld.sshfl [vmem:[#allocation1 + $0x8] sm:$0xff pattern:$0x75316420] }
  0xd8   :  { %v71_v27 = vld.sshfl [vmem:[#allocation1 + $0x10] sm:$0xff pattern:$0x75316420]  ;;  %v72_v28 = vld.sshfl [vmem:[#allocation1 + $0x18] sm:$0xff pattern:$0x75316420] }
  0xd9   :  { %v77_v29 = vsel %vm41_vm0, %v69_v25, 0.0  ;;  %v78_v30 = vsel %vm41_vm0, %v70_v26, 0.0  ;;  %109 = vst [vmem:[#allocation1] ss:$2 sm:$0xff] %v287_v0  ;;  %v80_v32 = vsel %vm41_vm0, %v71_v27, 0.0  ;;  %v82_v34 = vsel %vm41_vm0, %v72_v28, 0.0 }
  0xda   :  { %v79_v31 = vadd.f32 %v78_v30, %v77_v29  ;;  %111 = vst [vmem:[#allocation1 + $0x10] ss:$2 sm:$0xff] %v289_v1 }
  0xdc   :  { %v81_v33 = vadd.f32 %v80_v32, %v79_v31 }
  0xde   :  { %v83_v35 = vadd.f32 %v82_v34, %v81_v33 }
  0xe0   :  { %84 = vadd.xlane.f32.xlu0 %v83_v35  ;;  %v112_v36 = vld.sshfl [vmem:[#allocation1] sm:$0xff pattern:$0x75316420]  ;;  %v113_v37 = vld.sshfl [vmem:[#allocation1 + $0x8] sm:$0xff pattern:$0x75316420] }
  0xe1   :  { %v114_v38 = vld.sshfl [vmem:[#allocation1 + $0x10] sm:$0xff pattern:$0x75316420]  ;;  %v115_v39 = vld.sshfl [vmem:[#allocation1 + $0x18] sm:$0xff pattern:$0x75316420] }
  0xe2   :  { %v120_v40 = vsel %vm41_vm0, %v112_v36, inf  ;;  %v121_v41 = vsel %vm41_vm0, %v113_v37, inf  ;;  %v122_v42 = vsel %vm41_vm0, %v114_v38, inf  ;;  %v123_v43 = vsel %vm41_vm0, %v115_v39, inf }
  0xe3   :  { %v124_v44 = vmin.f32 %v120_v40, %v121_v41  ;;  %v125_v45 = vmin.f32 %v122_v42, %v123_v43 }
  0xe5   :  { %v126_v46 = vmin.f32 %v124_v44, %v125_v45 }
  0xe7   :  { %127 = vmin.xlane.f32.xlu1 %v126_v46 }
 0x153   :  { %v85_v47 = vpop.xlane.xlu0 %84 }
 0x154   :  { %v86_v48 = vrot.slane %v85_v47, 4 }
 0x156   :  { %v87_v49 = vadd.f32 %v86_v48, %v85_v47 }
 0x158   :  { %v88_v50 = vrot.slane %v87_v49, 2 }
 0x15a   :  { %v89_v51 = vadd.f32 %v88_v50, %v87_v49  ;;  %v128_v54 = vpop.xlane.xlu1 %127 }
 0x15b   :  { %v129_v55 = vrot.slane %v128_v54, 4 }
 0x15c   :  { %v90_v52 = vrot.slane %v89_v51, 1 }
 0x15d   :  { %v130_v57 = vmin.f32 %v128_v54, %v129_v55 }
 0x15e   :  { %v91_v53 = vadd.f32 %v90_v52, %v89_v51 }
 0x15f   :  { %v131_v59 = vrot.slane %v130_v57, 2 }
 0x160   :  { %187 = vpush %v91_v53 }
 0x161   :  { %v132_v62 = vmin.f32 %v130_v57, %v131_v59 }
 0x163   :  { %v133_v3 = vrot.slane %v132_v62, 1 }
 0x165   :  { %v134_v7 = vmin.f32 %v132_v62, %v133_v3 }
 0x191   :  { %s188_s15 = spop %187 }
 0x192   :  { %s93_s16 = smul.f32 0.0004885198, %s188_s15 }
 0x194   :  { %v94_v56 = vstv %s93_s16 }
 0x195   :  { %197 = vrsqrt.f32 %v94_v56  ;;  %vm102_vm1 = vcmp.eq.f32.partialorder %v94_v56, inf  ;;  %v105_v6 = vand.u32 2147483648, %v94_v56  ;;  %vm104_vm2 = vcmp.eq.f32.partialorder %v94_v56, 0.0 }
 0x19b   :  { %v198_v58 = vpop.eup %197 }
 0x19c   :  { %v96_v60 = vmul.f32 %v198_v58, %v94_v56 }
 0x19e   :  { %v97_v61 = vmul.f32 %v198_v58, %v96_v60 }
 0x1a0   :  { %v98_v63 = vmul.f32 0.5, %v97_v61 }
 0x1a2   :  { %v99_v2 = vsub.f32 1.5, %v98_v63 }
 0x1a4   :  { %v100_v4 = vmul.f32 %v198_v58, %v99_v2 }
 0x1a6   :  { %v101_v5 = vmul.f32 %v100_v4, %v94_v56 }
 0x1a8   :  { %v103_v8 = vsel %vm102_vm1, %v94_v56, %v101_v5 }
 0x1a9   :  { %v106_v9 = vsel %vm104_vm2, %v105_v6, %v103_v8 }
 0x1aa   :  { %189 = vpush %v106_v9 }
 0x1ab   :  { %191 = vpush %v134_v7 }
 0x1db   :  { %s190_s22 = spop %189 }
 0x1dc   :  { %s108_s23 = smul.f32 0.5, %s190_s22  ;;  %s192_s24 = spop %191 }
 0x1dd   :  { %137 = sst [smem:[#allocation7]] %s192_s24 }
 0x1de   :  { %v146_v15 = vstv %s108_s23  ;;  %172 = dma.smem_to_hbm %s268_s27, 16, %s170_s19, [#allocation5]  }
 0x1df   :  { %vm147_vm7 = vcmp.lt.f32.partialorder %v287_v0, %v146_v15  ;;  %vm148_vm8 = vcmp.lt.f32.partialorder %v289_v1, %v146_v15 }
 0x1e0   :  { %v149_v16 = vsel %vm147_vm7, 0.0, %v144_v13  ;;  %v150_v17 = vsel %vm148_vm8, 0.0, %v145_v14 }
 0x1e1   :  { %151 = vst [vmem:[#allocation6] sm:$0xff] %v149_v16 }
 0x1e2   :  { %152 = vst [vmem:[#allocation6 + $0x8] sm:$0xff] %v150_v17 }
 0x1e3   :  { %163 = dma.vmem_to_hbm [thread:$0]  %s159_s21, 256, %s161_s2, [#allocation4]  }
 0x1e4   :  { %261 = dma.done.wait [#allocation4], 256  }
 0x1e5   :  { %262 = vsyncadd [#allocation4], 4294967040 }
 0x1e6   :  { %263 = dma.done.wait [#allocation5], 16  }
 0x1e7   :  { %264 = vsyncadd [#allocation5], 4294967280 }
 0x1e8   :  { %181 = sfence }
 0x1e9   :  { %182 = vsyncpa [#allocation3], 1 }
 0x1ea   :  { %183 = vsyncpa [#allocation4], 1 }
 0x1eb   :  { %184 = vsyncpa [#allocation5], 1 }

</bundles_post_ra>
